<compile_context>
chip_gen: v7x
topology: tpu7x:2x2x1
jax: 0.10.0
libtpu: 0.0.40
codegen_flags: <defaults>
</compile_context>

<pallas_src>
import jax
import jax.numpy as jnp
from jax.experimental import pallas as pl
from jax.experimental.pallas import tpu as pltpu

LANE = 128


# ----------------------------------------------------------------------------
# Fused kernel
# ----------------------------------------------------------------------------
def gcn_fused_kernel(adj_ref, h0_ref, w1_ref, b1_ref, w2_ref, b2_ref,
                     w3_ref, b3_ref, o_ref):
    """out = (A_hat-prop(tanh(A_hat-prop(H0@W1)+b1) @ W2) -> tanh ...) @ W3 + b3.

    A_hat = D^{-1/2} (A + I) D^{-1/2}, deg from column sums of (A + I),
    matching the reference PyTorch GCNLayer (torch.sum(adj, dim=0)).
    """
    f32 = jnp.float32
    bf16 = jnp.bfloat16

    # --- degree normalization vector (computed once, reused by both layers) --
    # Self-loops guarantee deg >= 1, so no pow/isinf/where guard is needed.
    # The 1-D reduce + [:, None] broadcast is the single (small, proven)
    # lane->sublane relayout needed to get d in row orientation; at large N
    # this becomes a precomputed (1, N) scratch indexed per tile.
    deg = jnp.sum(adj_ref[...], axis=0) + 1.0          # column sums of (A + I)
    d_col = jax.lax.rsqrt(deg)[:, None]                # (N, 1), f32

    # Adjacency is 0/1 -> exact in bf16; feed the MXU bf16 operands with f32
    # accumulation throughout.
    adj_bf = adj_ref[...].astype(bf16)

    def propagate(x):
        """A_hat @ x without materializing A_hat (or the eye)."""
        y = d_col * x                                             # diag(d) @ x
        ay = jnp.dot(adj_bf, y.astype(bf16),
                     preferred_element_type=f32)                  # A @ (d x)
        return d_col * (ay + y)                                   # diag(d)(A+I)(d x)

    # --- layer 1: tanh(A_hat @ (H0 @ W1) + b1)  (reassociated, same math) ---
    hw1 = jnp.dot(h0_ref[...].astype(bf16), w1_ref[...],
                  preferred_element_type=f32)
    h1 = jnp.tanh(propagate(hw1) + b1_ref[...])

    # --- layer 2 ---
    hw2 = jnp.dot(h1.astype(bf16), w2_ref[...],
                  preferred_element_type=f32)
    h2 = jnp.tanh(propagate(hw2) + b2_ref[...])

    # --- final linear (W3 / b3 zero-padded to a lane-dense width so the only
    #     HBM store is an unmasked (N, 128) slab) ---
    o_ref[...] = (jnp.dot(h2.astype(bf16), w3_ref[...],
                          preferred_element_type=f32)
                  + b3_ref[...]).astype(o_ref.dtype)


# ----------------------------------------------------------------------------
# Parameters (deterministic, built in-script)
# ----------------------------------------------------------------------------
def init_gcn_params(key, nin, nout, nhid, nclass, num_nodes):
    ks = jax.random.split(key, 7)

    def linear_init(kw, kb, fan_in, fan_out):
        bound = 1.0 / jnp.sqrt(fan_in)
        # stored pre-transposed: (fan_in, fan_out)
        w = jax.random.uniform(kw, (fan_in, fan_out), jnp.float32, -bound, bound)
        b = jax.random.uniform(kb, (fan_out,), jnp.float32, -bound, bound)
        return w, b

    params = {}
    # NodeEmbeddings: nn.Embedding(num_nodes, nin).weight ~ N(0, 1)
    params["emb"] = jax.random.normal(ks[0], (num_nodes, nin), jnp.float32)
    params["w1"], params["b1"] = linear_init(ks[1], ks[2], nin, nhid)
    params["w2"], params["b2"] = linear_init(ks[3], ks[4], nhid, nout)
    params["w3"], params["b3"] = linear_init(ks[5], ks[6], nout, nclass)
    return params


# ----------------------------------------------------------------------------
# Forward wrapper: one fused pallas_call, lane-dense output, slice back
# ----------------------------------------------------------------------------
@jax.jit
def gcn_forward(params, adj_matrix):
    n = adj_matrix.shape[0]
    nclass = params["b3"].shape[0]
    nclass_pad = ((nclass + LANE - 1) // LANE) * LANE
    pad = nclass_pad - nclass

    # bf16 weight tiles (halves their DMA/VMEM footprint; MXU is bf16-native).
    w1 = params["w1"].astype(jnp.bfloat16)
    w2 = params["w2"].astype(jnp.bfloat16)
    # Zero-pad the final projection so the single HBM writeback is lane-dense.
    w3 = jnp.pad(params["w3"], ((0, 0), (0, pad))).astype(jnp.bfloat16)
    b3 = jnp.pad(params["b3"], ((0, pad),))

    vmem = pl.BlockSpec(memory_space=pltpu.MemorySpace.VMEM)
    out_padded = pl.pallas_call(
        gcn_fused_kernel,
        in_specs=[vmem] * 8,
        out_specs=vmem,
        out_shape=jax.ShapeDtypeStruct((n, nclass_pad), jnp.float32),
    )(
        adj_matrix,
        params["emb"],
        w1, params["b1"].reshape(1, -1),
        w2, params["b2"].reshape(1, -1),
        w3, b3.reshape(1, -1),
    )
    # TODO(synk): downstream consumers could take the padded (N, 128) slab
    # directly; the slice below is a separate (tiny) XLA copy on a
    # launch-overhead-bound kernel.
    return out_padded[:, :nclass]


if __name__ == "__main__":
    # Small shapes consistent with the module.
    num_nodes, nin, nhid, nout, nclass = 16, 32, 16, 8, 4

    key = jax.random.PRNGKey(0)
    k_params, k_adj = jax.random.split(key)

    params = init_gcn_params(k_params, nin, nout, nhid, nclass, num_nodes)

    # Symmetric 0/1 adjacency matrix (no self loops; kernel adds I).
    raw = jax.random.bernoulli(k_adj, 0.3, (num_nodes, num_nodes)).astype(jnp.float32)
    adj = jnp.triu(raw, 1)
    adj = adj + adj.T

    out = gcn_forward(params, adj)
    jax.block_until_ready(out)

    assert out.shape == (num_nodes, nclass)
    assert bool(jnp.all(jnp.isfinite(out)))
    print("KERNEL_OK")
</pallas_src>

<mosaic_0001>
module attributes {stable_mosaic.version = 11 : i64} {
  func.func @gcn_fused_kernel(%arg0: memref<16x16xf32, #tpu.memory_space<vmem>>, %arg1: memref<16x32xf32, #tpu.memory_space<vmem>>, %arg2: memref<32x16xbf16, #tpu.memory_space<vmem>>, %arg3: memref<1x16xf32, #tpu.memory_space<vmem>>, %arg4: memref<16x8xbf16, #tpu.memory_space<vmem>>, %arg5: memref<1x8xf32, #tpu.memory_space<vmem>>, %arg6: memref<8x128xbf16, #tpu.memory_space<vmem>>, %arg7: memref<1x128xf32, #tpu.memory_space<vmem>>, %arg8: memref<16x128xf32, #tpu.memory_space<vmem>>) attributes {dimension_semantics = [], scalar_prefetch = 0 : i64, scratch_operands = 0 : i64, tpu.core_type = #tpu.core_type<tc>} {
    %c0 = arith.constant 0 : index
    %c0_0 = arith.constant 0 : index
    %0 = vector.load %arg0[%c0, %c0_0] : memref<16x16xf32, #tpu.memory_space<vmem>>, vector<16x16xf32>
    %cst = arith.constant dense<0.000000e+00> : vector<16xf32>
    %1 = vector.multi_reduction <add>, %0, %cst [0] : vector<16x16xf32> to vector<16xf32>
    %cst_1 = arith.constant 1.000000e+00 : f32
    %2 = vector.broadcast %cst_1 : f32 to vector<16xf32>
    %3 = arith.addf %1, %2 : vector<16xf32>
    %4 = math.rsqrt %3 : vector<16xf32>
    %5 = vector.shape_cast %4 : vector<16xf32> to vector<16x1xf32>
    %c0_2 = arith.constant 0 : index
    %c0_3 = arith.constant 0 : index
    %6 = vector.load %arg0[%c0_2, %c0_3] : memref<16x16xf32, #tpu.memory_space<vmem>>, vector<16x16xf32>
    %7 = arith.truncf %6 : vector<16x16xf32> to vector<16x16xbf16>
    %c0_4 = arith.constant 0 : index
    %c0_5 = arith.constant 0 : index
    %8 = vector.load %arg1[%c0_4, %c0_5] : memref<16x32xf32, #tpu.memory_space<vmem>>, vector<16x32xf32>
    %9 = arith.truncf %8 : vector<16x32xf32> to vector<16x32xbf16>
    %c0_6 = arith.constant 0 : index
    %c0_7 = arith.constant 0 : index
    %10 = vector.load %arg2[%c0_6, %c0_7] : memref<32x16xbf16, #tpu.memory_space<vmem>>, vector<32x16xbf16>
    %cst_8 = arith.constant dense<0.000000e+00> : vector<16x16xf32>
    %11 = tpu.matmul %9, %10, %cst_8 {dimension_numbers = #tpu.dot_dimension_numbers<[1], [0], [0], [1], [0, 0, 1, 1], [], []>} : vector<16x32xbf16>, vector<32x16xbf16>, vector<16x16xf32> -> vector<16x16xf32>
    %12 = vector.broadcast %5 : vector<16x1xf32> to vector<16x16xf32>
    %13 = arith.mulf %12, %11 : vector<16x16xf32>
    %14 = arith.truncf %13 : vector<16x16xf32> to vector<16x16xbf16>
    %cst_9 = arith.constant dense<0.000000e+00> : vector<16x16xf32>
    %15 = tpu.matmul %7, %14, %cst_9 {dimension_numbers = #tpu.dot_dimension_numbers<[1], [0], [0], [1], [0, 0, 1, 1], [], []>} : vector<16x16xbf16>, vector<16x16xbf16>, vector<16x16xf32> -> vector<16x16xf32>
    %16 = arith.addf %15, %13 : vector<16x16xf32>
    %17 = vector.broadcast %5 : vector<16x1xf32> to vector<16x16xf32>
    %18 = arith.mulf %17, %16 : vector<16x16xf32>
    %c0_10 = arith.constant 0 : index
    %c0_11 = arith.constant 0 : index
    %19 = vector.load %arg3[%c0_10, %c0_11] : memref<1x16xf32, #tpu.memory_space<vmem>>, vector<1x16xf32>
    %20 = vector.broadcast %19 : vector<1x16xf32> to vector<16x16xf32>
    %21 = arith.addf %18, %20 : vector<16x16xf32>
    %22 = math.tanh %21 : vector<16x16xf32>
    %23 = arith.truncf %22 : vector<16x16xf32> to vector<16x16xbf16>
    %c0_12 = arith.constant 0 : index
    %c0_13 = arith.constant 0 : index
    %24 = vector.load %arg4[%c0_12, %c0_13] : memref<16x8xbf16, #tpu.memory_space<vmem>>, vector<16x8xbf16>
    %cst_14 = arith.constant dense<0.000000e+00> : vector<16x8xf32>
    %25 = tpu.matmul %23, %24, %cst_14 {dimension_numbers = #tpu.dot_dimension_numbers<[1], [0], [0], [1], [0, 0, 1, 1], [], []>} : vector<16x16xbf16>, vector<16x8xbf16>, vector<16x8xf32> -> vector<16x8xf32>
    %26 = vector.broadcast %5 : vector<16x1xf32> to vector<16x8xf32>
    %27 = arith.mulf %26, %25 : vector<16x8xf32>
    %28 = arith.truncf %27 : vector<16x8xf32> to vector<16x8xbf16>
    %cst_15 = arith.constant dense<0.000000e+00> : vector<16x8xf32>
    %29 = tpu.matmul %7, %28, %cst_15 {dimension_numbers = #tpu.dot_dimension_numbers<[1], [0], [0], [1], [0, 0, 1, 1], [], []>} : vector<16x16xbf16>, vector<16x8xbf16>, vector<16x8xf32> -> vector<16x8xf32>
    %30 = arith.addf %29, %27 : vector<16x8xf32>
    %31 = vector.broadcast %5 : vector<16x1xf32> to vector<16x8xf32>
    %32 = arith.mulf %31, %30 : vector<16x8xf32>
    %c0_16 = arith.constant 0 : index
    %c0_17 = arith.constant 0 : index
    %33 = vector.load %arg5[%c0_16, %c0_17] : memref<1x8xf32, #tpu.memory_space<vmem>>, vector<1x8xf32>
    %34 = vector.broadcast %33 : vector<1x8xf32> to vector<16x8xf32>
    %35 = arith.addf %32, %34 : vector<16x8xf32>
    %36 = math.tanh %35 : vector<16x8xf32>
    %37 = arith.truncf %36 : vector<16x8xf32> to vector<16x8xbf16>
    %c0_18 = arith.constant 0 : index
    %c0_19 = arith.constant 0 : index
    %38 = vector.load %arg6[%c0_18, %c0_19] : memref<8x128xbf16, #tpu.memory_space<vmem>>, vector<8x128xbf16>
    %cst_20 = arith.constant dense<0.000000e+00> : vector<16x128xf32>
    %39 = tpu.matmul %37, %38, %cst_20 {dimension_numbers = #tpu.dot_dimension_numbers<[1], [0], [0], [1], [0, 0, 1, 1], [], []>} : vector<16x8xbf16>, vector<8x128xbf16>, vector<16x128xf32> -> vector<16x128xf32>
    %c0_21 = arith.constant 0 : index
    %c0_22 = arith.constant 0 : index
    %40 = vector.load %arg7[%c0_21, %c0_22] : memref<1x128xf32, #tpu.memory_space<vmem>>, vector<1x128xf32>
    %41 = vector.broadcast %40 : vector<1x128xf32> to vector<16x128xf32>
    %42 = arith.addf %39, %41 : vector<16x128xf32>
    %c0_23 = arith.constant 0 : index
    %c0_24 = arith.constant 0 : index
    %43 = vector.load %arg8[%c0_23, %c0_24] : memref<16x128xf32, #tpu.memory_space<vmem>>, vector<16x128xf32>
    tpu.vector_store %arg8[%c0_23, %c0_24], %42 {strides = array<i32>} : memref<16x128xf32, #tpu.memory_space<vmem>>, vector<16x128xf32>,
    return
  }
}

</mosaic_0001>

<bundles_post_ra>
// kernel: gcn_forward.1
= control target key start
LH: loop header
LB: loop body
LE: loop exit
PB: predicated region body
PF: predicated region fallthrough
CT: control target
= control target key end

     0   :  { %v419_v0 = vmov 0.0   ;;  %vm420_vm0 = vmmov 0   ;;  %vm32_vm1 = vcmask 130048   ;;  %vm71_vm2 = vcmask 261120   ;;  %s526_s2 = inlined_call_operand.vmem [shape: bf16[32,16], index: 2, kind: input, shape index: {}]   ;;  %s527_s1 = inlined_call_operand.vmem [shape: f32[16,32], index: 1, kind: input, shape index: {}]   ;;  %s528_s0 = inlined_call_operand.vmem [shape: f32[16,16], index: 0, kind: input, shape index: {}]   ;;  %s529_s4 = inlined_call_operand.vmem [shape: bf16[16,8], index: 4, kind: input, shape index: {}]   ;;  %s530_s3 = inlined_call_operand.vmem [shape: f32[1,16], index: 3, kind: input, shape index: {}]   ;;  %s531_s6 = inlined_call_operand.vmem [shape: bf16[8,128], index: 6, kind: input, shape index: {}]   ;;  %s532_s5 = inlined_call_operand.vmem [shape: f32[1,8], index: 5, kind: input, shape index: {}]   ;;  %s533_s7 = inlined_call_operand.vmem [shape: f32[1,128], index: 7, kind: input, shape index: {}]   ;;  %s534_s8 = inlined_call_operand.vmem [shape: f32[16,128], index: 8, kind: output, shape index: {}]  }
   0x1   :  { %372 = vmatprep.subr.bf16.mxu0 %v419_v0  ;;  %v406_v1 = vld [vmem:[%s526_s2] sm:$0xff]   ;;  %376 = vmatprep.mubr.msk.bf16.mxu0 %vm420_vm0, %v419_v0  ;;  %v407_v2 = vld [vmem:[%s526_s2 + $0x8] sm:$0xff]   ;;  %vm299_vm3 = vcmask 1043456   ;;  %vm295_vm4 = vcmask 64512  }
   0x2   :  { %380 = vmatprep.subr.bf16.mxu1 %v419_v0  ;;  %382 = vmatprep.mubr.msk.bf16.mxu1 %vm420_vm0, %v419_v0  ;;  %v52_v3 = vld [vmem:[%s527_s1] sm:$0xff]  ;;  %v53_v4 = vld [vmem:[%s527_s1 + $0x8] sm:$0xff] }
   0x3   :  { %373 = vmatpush3.bf16.msra.mxu0 %v406_v1  ;;  %v30_v5 = vld [vmem:[%s528_s0] sm:$0xff]  ;;  %v31_v6 = vld [vmem:[%s528_s0 + $0x8] sm:$0xff]  ;;  %v54_v9 = vpack.c.bf16 %v53_v4, %v52_v3 }
   0x4   :  { %374 = vmatprep.subr.bf16.mxu0 %v419_v0  ;;  %v33_v7 = vsel %vm32_vm1, %v30_v5, 0.0  ;;  %v34_v8 = vsel %vm32_vm1, %v31_v6, 0.0  ;;  %v51_v28 = vpack.c.bf16 %v31_v6, %v30_v5  ;;  %v408_v29 = vld [vmem:[%s529_s4] sm:$0xff]  }
   0x5   :  { %v35_v10 = vadd.f32 %v34_v8, %v33_v7  ;;  %v354_v33 = vld [vmem:[%s530_s3] ss:$0 sm:$0xff] }
   0x6   :  { %v287_v51 = vld [vmem:[%s531_s6] sm:$0xf] }
   0x7   :  { %375 = vmatpush3.bf16.msra.mxu0 %v407_v2  ;;  %v36_v11 = vrot.slane %v35_v10, 4  ;;  %v301_v52 = vsel %vm299_vm3, %v287_v51, 0  ;;  %v358_v56 = vld [vmem:[%s532_s5] ss:$0 sm:$0xff] }
   0x8   :  { %392 = vmatprep.subr.bf16.mxu0 %v419_v0  ;;  %v359_v3 = vld [vmem:[%s533_s7] ss:$0 sm:$0xff] }
   0x9   :  { %v37_v12 = vadd.f32 %v36_v11, %v35_v10 }
   0xa   :  { %377 = vmatmul.mubr.msk.bf16.vlgmr.msra.gmra.mrb[0].mxu0 %vm71_vm2, %v54_v9 }
   0xb   :  { %394 = vmatprep.mubr.msk.bf16.mxu0 %vm420_vm0, %v419_v0  ;;  %v38_v13 = vrot.slane %v37_v12, 2 }
   0xd   :  { %v39_v14 = vadd.f32 %v38_v13, %v37_v12 }
   0xf   :  { %v40_v15 = vrot.slane %v39_v14, 1 }
  0x11   :  { %v41_v16 = vadd.f32 %v40_v15, %v39_v14 }
  0x13   :  { %v42_v17 = vadd.f32 1.0, %v41_v16 }
  0x15   :  { %409 = vrsqrt.f32 %v42_v17 }
  0x1f   :  { %v410_v18 = vpop.eup %409 }
  0x20   :  { %45 = vbcast.lane.b32.xlu0 %v410_v18, 256 }
  0x24   :  { %49 = vbcast.lane.b32.xlu0 %v410_v18, 264 }
  0x92   :  { %v46_v19 = vpop.permute.xlu0 %45 }
  0x96   :  { %v50_v21 = vpop.permute.xlu0 %49 }
  0xdd   :  { %v109_v20 = vpop.f32.mrb[0].mxu0 }
  0xde   :  { %v378_v22 = vpop.f32.mrb[1].mxu0  ;;  %v116_v24 = vmul.f32 %v109_v20, %v46_v19 }
  0xdf   :  { %v112_v23 = vpop.f32.mrb[2].mxu0 }
  0xe0   :  { %v379_v25 = vpop.f32.mrb[3].mxu0  ;;  %v117_v26 = vmul.f32 %v112_v23, %v50_v21 }
  0xe2   :  { %v118_v27 = vpack.c.bf16 %v117_v26, %v116_v24 }
  0xe4   :  { %381 = vmatpush3.bf16.msra.mxu1 %v118_v27 }
  0xe5   :  { %386 = vmatprep.subr.bf16.mxu1 %v419_v0 }
  0xe7   :  { %383 = vmatmul.mubr.msk.bf16.vlgmr.msra.gmra.mrb[0].mxu1 %vm32_vm1, %v51_v28 }
  0xe8   :  { %388 = vmatprep.mubr.msk.bf16.mxu1 %vm420_vm0, %v419_v0  ;;  %387 = vmatpush3.bf16.msra.mxu1 %v408_v29 }
  0xe9   :  { %398 = vmatprep.subr.bf16.mxu1 %v419_v0 }
 0x1ba   :  { %v156_v30 = vpop.f32.mrb[0].mxu1 }
 0x1bb   :  { %v157_v31 = vadd.f32 %v156_v30, %v116_v24  ;;  %v384_v32 = vpop.f32.mrb[1].mxu1 }
 0x1bc   :  { %v159_v34 = vpop.f32.mrb[2].mxu1 }
 0x1bd   :  { %v163_v35 = vmul.f32 %v157_v31, %v46_v19  ;;  %v160_v36 = vadd.f32 %v159_v34, %v117_v26  ;;  %v385_v37 = vpop.f32.mrb[3].mxu1 }
 0x1bf   :  { %v172_v38 = vadd.f32 %v354_v33, %v163_v35  ;;  %v164_v39 = vmul.f32 %v160_v36, %v50_v21 }
 0x1c1   :  { %v173_v40 = vadd.f32 %v354_v33, %v164_v39  ;;  %411 = vtanh.f32 %v172_v38 }
 0x1c3   :  { %413 = vtanh.f32 %v173_v40 }
 0x1cb   :  { %v412_v41 = vpop.eup %411 }
 0x1cd   :  { %v414_v42 = vpop.eup %413 }
 0x1ce   :  { %v176_v43 = vpack.c.bf16 %v414_v42, %v412_v41 }
 0x1d0   :  { %389 = vmatmul.mubr.msk.bf16.vlgmr.msra.gmra.mrb[4].mxu1 %vm32_vm1, %v176_v43 }
 0x1d1   :  { %400 = vmatprep.mubr.msk.bf16.mxu1 %vm420_vm0, %v419_v0  ;;  %399 = vmatpush3.bf16.msra.mxu1 %v301_v52 }
 0x2a3   :  { %v222_v44 = vpop.f32.mrb[4].mxu1 }
 0x2a4   :  { %v390_v45 = vpop.f32.mrb[5].mxu1  ;;  %v229_v47 = vmul.f32 %v222_v44, %v46_v19 }
 0x2a5   :  { %v225_v46 = vpop.f32.mrb[6].mxu1 }
 0x2a6   :  { %v230_v48 = vmul.f32 %v225_v46, %v50_v21  ;;  %v391_v49 = vpop.f32.mrb[7].mxu1 }
 0x2a8   :  { %v231_v50 = vpack.c.bf16 %v230_v48, %v229_v47 }
 0x2aa   :  { %393 = vmatpush3.bf16.msra.mxu0 %v231_v50 }
 0x2ad   :  { %395 = vmatmul.mubr.msk.bf16.vlgmr.msra.gmra.mrb[4].mxu0 %vm32_vm1, %v51_v28 }
 0x380   :  { %v266_v53 = vpop.f32.mrb[4].mxu0 }
 0x381   :  { %v267_v54 = vadd.f32 %v266_v53, %v229_v47  ;;  %v396_v55 = vpop.f32.mrb[5].mxu0 }
 0x382   :  { %v269_v57 = vpop.f32.mrb[6].mxu0 }
 0x383   :  { %v273_v58 = vmul.f32 %v267_v54, %v46_v19  ;;  %v270_v59 = vadd.f32 %v269_v57, %v230_v48  ;;  %v397_v60 = vpop.f32.mrb[7].mxu0 }
 0x385   :  { %v282_v61 = vadd.f32 %v358_v56, %v273_v58  ;;  %v274_v62 = vmul.f32 %v270_v59, %v50_v21 }
 0x387   :  { %v283_v63 = vadd.f32 %v358_v56, %v274_v62  ;;  %415 = vtanh.f32 %v282_v61 }
 0x389   :  { %417 = vtanh.f32 %v283_v63 }
 0x391   :  { %v416_v0 = vpop.eup %415 }
 0x393   :  { %v418_v1 = vpop.eup %417 }
 0x394   :  { %v286_v2 = vpack.c.bf16 %v418_v1, %v416_v0 }
 0x396   :  { %401 = vmatmul.mubr.msk.bf16.vlgmr.msra.gmra.mrb[8].mxu1 %vm295_vm4, %v286_v2 }
 0x469   :  { %v337_v4 = vpop.f32.mrb[8].mxu1 }
 0x46a   :  { %v338_v5 = vadd.f32 %v359_v3, %v337_v4  ;;  %v402_v6 = vpop.f32.mrb[9].mxu1 }
 0x46b   :  { %v340_v7 = vpop.f32.mrb[10].mxu1 }
 0x46c   :  { %344 = vst [vmem:[%s534_s8] sm:$0xff] %v338_v5  ;;  %v341_v8 = vadd.f32 %v359_v3, %v340_v7  ;;  %v403_v9 = vpop.f32.mrb[11].mxu1 }
 0x46e   :  { %345 = vst [vmem:[%s534_s8 + $0x8] sm:$0xff] %v341_v8 }

</bundles_post_ra>
